<compile_context>
chip_gen: v5e
topology: v5e:2x2
jax: 0.10.0
libtpu: 0.0.40
codegen_flags: <defaults>
</compile_context>

<pallas_src>
import jax
import jax.numpy as jnp
from jax.experimental import pallas as pl
from jax.experimental.pallas import tpu as pltpu


# ----------------------------------------------------------------------------
# Fused ResNetBlock kernel (one batch element per grid step, NCL layout)
# ----------------------------------------------------------------------------
def _make_block_kernel(L, ksize, pad, cin, cout, identity_shortcut):
    """relu( conv2(relu(conv1(x)*bn1))*bn2 + shortcut(x) ) for one batch row.
    BN is pre-folded into the weights; all intermediates stay in VMEM/vregs."""
    assert 2 * pad == ksize - 1, "residual add requires 'same' conv length"

    def pad_lanes(v, c):
        # zero 'same' padding along the length (lane) axis, in-register
        z = jnp.zeros((c, pad), jnp.float32)
        return jnp.concatenate([z, v, z], axis=1)          # (c, L + 2*pad)

    def conv(xp, w_ref, b_ref):
        # xp: (C, L+2p) padded input; w_ref: (ksize, Cout, C); b_ref: (Cout, 1)
        acc = b_ref[...] + jnp.dot(w_ref[0], xp[:, 0:L],
                                   preferred_element_type=jnp.float32)
        for k in range(1, ksize):                          # static unrolled taps
            acc = acc + jnp.dot(w_ref[k], xp[:, k:k + L],
                                preferred_element_type=jnp.float32)
        return acc                                          # (Cout, L)

    if identity_shortcut:
        def kernel(x_ref, w1_ref, b1_ref, w2_ref, b2_ref, o_ref):
            x = x_ref[0]                                    # (Cin, L), Cin == Cout
            xp = pad_lanes(x, cin)
            h = jnp.maximum(conv(xp, w1_ref, b1_ref), 0.0)  # conv1 + bn1 + relu
            hp = pad_lanes(h, cout)
            y = conv(hp, w2_ref, b2_ref) + x                # conv2 + bn2 + identity
            o_ref[0] = jnp.maximum(y, 0.0)
        return kernel

    def kernel(x_ref, w1_ref, b1_ref, w2_ref, b2_ref, ws_ref, bs_ref, o_ref):
        x = x_ref[0]                                        # (Cin, L)
        xp = pad_lanes(x, cin)
        h = jnp.maximum(conv(xp, w1_ref, b1_ref), 0.0)
        hp = pad_lanes(h, cout)
        res = jnp.dot(ws_ref[...], x,                       # 1x1-conv projection
                      preferred_element_type=jnp.float32) + bs_ref[...]
        y = conv(hp, w2_ref, b2_ref) + res
        o_ref[0] = jnp.maximum(y, 0.0)
    return kernel


def _full_spec(shape):
    nd = len(shape)
    return pl.BlockSpec(shape, lambda b, _nd=nd: (0,) * _nd)


# ----------------------------------------------------------------------------
# Parameter handling (fold BN once, statically) and the Pallas forward wrapper
# ----------------------------------------------------------------------------
def fold_block_params(raw, eps=1e-5):
    """Fold eval-mode BatchNorm into the conv weights/bias and reshape to the
    kernel layout (ksize, Cout, Cin). Done ONCE at init, never per forward."""
    def fold(w, b, gamma, beta, mean, var):
        scale = gamma / jnp.sqrt(var + eps)                        # (Cout,)
        wf = jnp.transpose(w, (2, 0, 1)) * scale[None, :, None]    # (K, Cout, Cin)
        bf = (b * scale + beta - mean * scale).reshape(-1, 1)      # (Cout, 1)
        return wf.astype(jnp.float32), bf.astype(jnp.float32)

    p = {}
    p["w1"], p["b1"] = fold(raw["w1"], raw["b1"], raw["gamma1"], raw["beta1"],
                            raw["mean1"], raw["var1"])
    p["w2"], p["b2"] = fold(raw["w2"], raw["b2"], raw["gamma2"], raw["beta2"],
                            raw["mean2"], raw["var2"])
    if "ws" in raw:                          # projection shortcut (1x1 conv, no BN)
        p["ws"] = raw["ws"][:, :, 0].astype(jnp.float32)           # (Cout, Cin)
        p["bs"] = raw["bs"].reshape(-1, 1).astype(jnp.float32)     # (Cout, 1)
    return p


def resnet_block_forward(folded, x_ncl):
    """x_ncl: (N, Cin, L) exactly like the PyTorch Conv1d input. Returns (N, Cout, L).
    No wrapper-side layout ops: the single pallas_call is the whole forward."""
    N, cin, L = x_ncl.shape
    ksize, cout, cin_w = folded["w1"].shape
    assert cin_w == cin
    pad = (ksize - 1) // 2
    identity = "ws" not in folded

    kernel = _make_block_kernel(L, ksize, pad, cin, cout, identity)

    in_specs = [pl.BlockSpec((1, cin, L), lambda b: (b, 0, 0)),
                _full_spec(folded["w1"].shape), _full_spec(folded["b1"].shape),
                _full_spec(folded["w2"].shape), _full_spec(folded["b2"].shape)]
    operands = [x_ncl.astype(jnp.float32), folded["w1"], folded["b1"],
                folded["w2"], folded["b2"]]
    if not identity:
        in_specs += [_full_spec(folded["ws"].shape), _full_spec(folded["bs"].shape)]
        operands += [folded["ws"], folded["bs"]]

    return pl.pallas_call(
        kernel,
        out_shape=jax.ShapeDtypeStruct((N, cout, L), jnp.float32),
        grid=(N,),
        in_specs=in_specs,
        out_specs=pl.BlockSpec((1, cout, L), lambda b: (b, 0, 0)),
        compiler_params=pltpu.CompilerParams(
            dimension_semantics=("parallel",),        # v7x: both TCs share batch
            vmem_limit_bytes=16 * 1024 * 1024),       # tiny footprint, v7x-safe
    )(*operands)


# ----------------------------------------------------------------------------
# Deterministic parameter init (PyTorch layouts) and plain-JAX reference
# ----------------------------------------------------------------------------
def init_block_params(key, cin, cout, ksize=3):
    ks = iter(jax.random.split(key, 16))

    def conv_w(co, ci, k):
        w = jax.random.normal(next(ks), (co, ci, k), jnp.float32) / jnp.sqrt(ci * k)
        b = 0.05 * jax.random.normal(next(ks), (co,), jnp.float32)
        return w, b

    raw = {}
    raw["w1"], raw["b1"] = conv_w(cout, cin, ksize)
    raw["w2"], raw["b2"] = conv_w(cout, cout, ksize)
    raw["gamma1"] = 0.5 + 0.5 * jax.random.uniform(next(ks), (cout,), jnp.float32)
    raw["beta1"] = 0.05 * jax.random.normal(next(ks), (cout,), jnp.float32)
    raw["mean1"] = 0.05 * jax.random.normal(next(ks), (cout,), jnp.float32)
    raw["var1"] = 0.5 + jax.random.uniform(next(ks), (cout,), jnp.float32)
    raw["gamma2"] = 0.5 + 0.5 * jax.random.uniform(next(ks), (cout,), jnp.float32)
    raw["beta2"] = 0.05 * jax.random.normal(next(ks), (cout,), jnp.float32)
    raw["mean2"] = 0.05 * jax.random.normal(next(ks), (cout,), jnp.float32)
    raw["var2"] = 0.5 + jax.random.uniform(next(ks), (cout,), jnp.float32)
    if cin != cout:
        raw["ws"], raw["bs"] = conv_w(cout, cin, 1)
    return raw


def ref_resnet_block(raw, x_ncl, eps=1e-5):
    """Plain-JAX mirror of the PyTorch ResNetBlock forward (eval-mode BN)."""
    hp = jax.lax.Precision.HIGHEST

    def conv1d(x, w, b, pad):
        y = jax.lax.conv_general_dilated(
            x, w, window_strides=(1,), padding=[(pad, pad)],
            dimension_numbers=("NCH", "OIH", "NCH"), precision=hp)
        return y + b[None, :, None]

    def bn(x, gamma, beta, mean, var):
        inv = gamma / jnp.sqrt(var + eps)
        return (x - mean[None, :, None]) * inv[None, :, None] + beta[None, :, None]

    ksize = raw["w1"].shape[2]
    pad = (ksize - 1) // 2
    shortcut = x_ncl if "ws" not in raw else conv1d(x_ncl, raw["ws"], raw["bs"], 0)
    h = jax.nn.relu(bn(conv1d(x_ncl, raw["w1"], raw["b1"], pad),
                       raw["gamma1"], raw["beta1"], raw["mean1"], raw["var1"]))
    y = bn(conv1d(h, raw["w2"], raw["b2"], pad),
           raw["gamma2"], raw["beta2"], raw["mean2"], raw["var2"])
    return jax.nn.relu(y + shortcut)


# TODO(synk): training-mode BatchNorm (running-stat updates) is not implemented;
# the kernel implements the inference forward with BN folded into the weights.

# ----------------------------------------------------------------------------
if __name__ == "__main__":
    key = jax.random.PRNGKey(0)
    k_x1, k_p1, k_x2, k_p2 = jax.random.split(key, 4)
    N, L = 2, 16

    # Case 1: identity shortcut (in_channels == out_channels)
    cin = cout = 16
    x1 = jax.random.normal(k_x1, (N, cin, L), jnp.float32)
    raw1 = init_block_params(k_p1, cin, cout, ksize=3)
    folded1 = fold_block_params(raw1)
    out1 = jax.block_until_ready(resnet_block_forward(folded1, x1))
    ref1 = jax.block_until_ready(ref_resnet_block(raw1, x1))
    assert out1.shape == (N, cout, L), out1.shape
    assert bool(jnp.all(jnp.isfinite(out1)))
    assert bool(jnp.allclose(out1, ref1, atol=3e-3, rtol=3e-3)), \
        float(jnp.max(jnp.abs(out1 - ref1)))

    # Case 2: projection (1x1-conv) shortcut (in_channels != out_channels)
    cin2, cout2 = 12, 24
    x2 = jax.random.normal(k_x2, (N, cin2, L), jnp.float32)
    raw2 = init_block_params(k_p2, cin2, cout2, ksize=3)
    folded2 = fold_block_params(raw2)
    out2 = jax.block_until_ready(resnet_block_forward(folded2, x2))
    ref2 = jax.block_until_ready(ref_resnet_block(raw2, x2))
    assert out2.shape == (N, cout2, L), out2.shape
    assert bool(jnp.all(jnp.isfinite(out2)))
    assert bool(jnp.allclose(out2, ref2, atol=3e-3, rtol=3e-3)), \
        float(jnp.max(jnp.abs(out2 - ref2)))

    print("KERNEL_OK")
</pallas_src>

<mosaic_0001>
module attributes {stable_mosaic.version = 11 : i64} {
  func.func @kernel(%arg0: i32, %arg1: memref<1x16x16xf32, #tpu.memory_space<vmem>>, %arg2: memref<3x16x16xf32, #tpu.memory_space<vmem>>, %arg3: memref<16x1xf32, #tpu.memory_space<vmem>>, %arg4: memref<3x16x16xf32, #tpu.memory_space<vmem>>, %arg5: memref<16x1xf32, #tpu.memory_space<vmem>>, %arg6: memref<1x16x16xf32, #tpu.memory_space<vmem>>) attributes {dimension_semantics = [#tpu.dimension_semantics<parallel>], iteration_bounds = array<i64: 2>, scalar_prefetch = 0 : i64, scratch_operands = 0 : i64, tpu.core_type = #tpu.core_type<tc>, window_params = [{transform_indices = @transform_0, window_bounds = array<i64: 1, 16, 16>}, {pipeline_mode = #tpu.pipeline_mode<synchronous>, transform_indices = @transform_1, window_bounds = array<i64: 3, 16, 16>}, {pipeline_mode = #tpu.pipeline_mode<synchronous>, transform_indices = @transform_2, window_bounds = array<i64: 16, 1>}, {pipeline_mode = #tpu.pipeline_mode<synchronous>, transform_indices = @transform_3, window_bounds = array<i64: 3, 16, 16>}, {pipeline_mode = #tpu.pipeline_mode<synchronous>, transform_indices = @transform_4, window_bounds = array<i64: 16, 1>}, {transform_indices = @transform_5, window_bounds = array<i64: 1, 16, 16>}]} {
    %c0 = arith.constant 0 : index
    %c0_0 = arith.constant 0 : index
    %c0_1 = arith.constant 0 : index
    %0 = vector.load %arg1[%c0, %c0_0, %c0_1] : memref<1x16x16xf32, #tpu.memory_space<vmem>>, vector<1x16x16xf32>
    %1 = vector.shape_cast %0 : vector<1x16x16xf32> to vector<16x16xf32>
    %cst = arith.constant 0.000000e+00 : f32
    %2 = vector.broadcast %cst : f32 to vector<16x1xf32>
    %3 = tpu.concatenate %2, %1, %2 in 1 : vector<16x1xf32>, vector<16x16xf32>, vector<16x1xf32> -> vector<16x18xf32>
    %c0_2 = arith.constant 0 : index
    %c0_3 = arith.constant 0 : index
    %4 = vector.load %arg3[%c0_2, %c0_3] : memref<16x1xf32, #tpu.memory_space<vmem>>, vector<16x1xf32>
    %c0_4 = arith.constant 0 : index
    %c0_5 = arith.constant 0 : index
    %c0_6 = arith.constant 0 : index
    %5 = vector.load %arg2[%c0_4, %c0_5, %c0_6] : memref<3x16x16xf32, #tpu.memory_space<vmem>>, vector<1x16x16xf32>
    %6 = vector.shape_cast %5 : vector<1x16x16xf32> to vector<16x16xf32>
    %7 = vector.extract_strided_slice %3 {offsets = [0, 0], sizes = [16, 16], strides = [1, 1]} : vector<16x18xf32> to vector<16x16xf32>
    %cst_7 = arith.constant dense<0.000000e+00> : vector<16x16xf32>
    %8 = tpu.matmul %6, %7, %cst_7 {dimension_numbers = #tpu.dot_dimension_numbers<[1], [0], [0], [1], [0, 0, 1, 1], [], []>} : vector<16x16xf32>, vector<16x16xf32>, vector<16x16xf32> -> vector<16x16xf32>
    %9 = vector.broadcast %4 : vector<16x1xf32> to vector<16x16xf32>
    %10 = arith.addf %9, %8 : vector<16x16xf32>
    %c1 = arith.constant 1 : index
    %c0_8 = arith.constant 0 : index
    %c0_9 = arith.constant 0 : index
    %11 = vector.load %arg2[%c1, %c0_8, %c0_9] : memref<3x16x16xf32, #tpu.memory_space<vmem>>, vector<1x16x16xf32>
    %12 = vector.shape_cast %11 : vector<1x16x16xf32> to vector<16x16xf32>
    %13 = vector.extract_strided_slice %3 {offsets = [0, 1], sizes = [16, 16], strides = [1, 1]} : vector<16x18xf32> to vector<16x16xf32>
    %cst_10 = arith.constant dense<0.000000e+00> : vector<16x16xf32>
    %14 = tpu.matmul %12, %13, %cst_10 {dimension_numbers = #tpu.dot_dimension_numbers<[1], [0], [0], [1], [0, 0, 1, 1], [], []>} : vector<16x16xf32>, vector<16x16xf32>, vector<16x16xf32> -> vector<16x16xf32>
    %15 = arith.addf %10, %14 : vector<16x16xf32>
    %c2 = arith.constant 2 : index
    %c0_11 = arith.constant 0 : index
    %c0_12 = arith.constant 0 : index
    %16 = vector.load %arg2[%c2, %c0_11, %c0_12] : memref<3x16x16xf32, #tpu.memory_space<vmem>>, vector<1x16x16xf32>
    %17 = vector.shape_cast %16 : vector<1x16x16xf32> to vector<16x16xf32>
    %18 = vector.extract_strided_slice %3 {offsets = [0, 2], sizes = [16, 16], strides = [1, 1]} : vector<16x18xf32> to vector<16x16xf32>
    %cst_13 = arith.constant dense<0.000000e+00> : vector<16x16xf32>
    %19 = tpu.matmul %17, %18, %cst_13 {dimension_numbers = #tpu.dot_dimension_numbers<[1], [0], [0], [1], [0, 0, 1, 1], [], []>} : vector<16x16xf32>, vector<16x16xf32>, vector<16x16xf32> -> vector<16x16xf32>
    %20 = arith.addf %15, %19 : vector<16x16xf32>
    %cst_14 = arith.constant 0.000000e+00 : f32
    %21 = vector.broadcast %cst_14 : f32 to vector<16x16xf32>
    %22 = arith.maximumf %20, %21 : vector<16x16xf32>
    %cst_15 = arith.constant 0.000000e+00 : f32
    %23 = vector.broadcast %cst_15 : f32 to vector<16x1xf32>
    %24 = tpu.concatenate %23, %22, %23 in 1 : vector<16x1xf32>, vector<16x16xf32>, vector<16x1xf32> -> vector<16x18xf32>
    %c0_16 = arith.constant 0 : index
    %c0_17 = arith.constant 0 : index
    %25 = vector.load %arg5[%c0_16, %c0_17] : memref<16x1xf32, #tpu.memory_space<vmem>>, vector<16x1xf32>
    %c0_18 = arith.constant 0 : index
    %c0_19 = arith.constant 0 : index
    %c0_20 = arith.constant 0 : index
    %26 = vector.load %arg4[%c0_18, %c0_19, %c0_20] : memref<3x16x16xf32, #tpu.memory_space<vmem>>, vector<1x16x16xf32>
    %27 = vector.shape_cast %26 : vector<1x16x16xf32> to vector<16x16xf32>
    %28 = vector.extract_strided_slice %24 {offsets = [0, 0], sizes = [16, 16], strides = [1, 1]} : vector<16x18xf32> to vector<16x16xf32>
    %cst_21 = arith.constant dense<0.000000e+00> : vector<16x16xf32>
    %29 = tpu.matmul %27, %28, %cst_21 {dimension_numbers = #tpu.dot_dimension_numbers<[1], [0], [0], [1], [0, 0, 1, 1], [], []>} : vector<16x16xf32>, vector<16x16xf32>, vector<16x16xf32> -> vector<16x16xf32>
    %30 = vector.broadcast %25 : vector<16x1xf32> to vector<16x16xf32>
    %31 = arith.addf %30, %29 : vector<16x16xf32>
    %c1_22 = arith.constant 1 : index
    %c0_23 = arith.constant 0 : index
    %c0_24 = arith.constant 0 : index
    %32 = vector.load %arg4[%c1_22, %c0_23, %c0_24] : memref<3x16x16xf32, #tpu.memory_space<vmem>>, vector<1x16x16xf32>
    %33 = vector.shape_cast %32 : vector<1x16x16xf32> to vector<16x16xf32>
    %34 = vector.extract_strided_slice %24 {offsets = [0, 1], sizes = [16, 16], strides = [1, 1]} : vector<16x18xf32> to vector<16x16xf32>
    %cst_25 = arith.constant dense<0.000000e+00> : vector<16x16xf32>
    %35 = tpu.matmul %33, %34, %cst_25 {dimension_numbers = #tpu.dot_dimension_numbers<[1], [0], [0], [1], [0, 0, 1, 1], [], []>} : vector<16x16xf32>, vector<16x16xf32>, vector<16x16xf32> -> vector<16x16xf32>
    %36 = arith.addf %31, %35 : vector<16x16xf32>
    %c2_26 = arith.constant 2 : index
    %c0_27 = arith.constant 0 : index
    %c0_28 = arith.constant 0 : index
    %37 = vector.load %arg4[%c2_26, %c0_27, %c0_28] : memref<3x16x16xf32, #tpu.memory_space<vmem>>, vector<1x16x16xf32>
    %38 = vector.shape_cast %37 : vector<1x16x16xf32> to vector<16x16xf32>
    %39 = vector.extract_strided_slice %24 {offsets = [0, 2], sizes = [16, 16], strides = [1, 1]} : vector<16x18xf32> to vector<16x16xf32>
    %cst_29 = arith.constant dense<0.000000e+00> : vector<16x16xf32>
    %40 = tpu.matmul %38, %39, %cst_29 {dimension_numbers = #tpu.dot_dimension_numbers<[1], [0], [0], [1], [0, 0, 1, 1], [], []>} : vector<16x16xf32>, vector<16x16xf32>, vector<16x16xf32> -> vector<16x16xf32>
    %41 = arith.addf %36, %40 : vector<16x16xf32>
    %42 = arith.addf %41, %1 : vector<16x16xf32>
    %cst_30 = arith.constant 0.000000e+00 : f32
    %43 = vector.broadcast %cst_30 : f32 to vector<16x16xf32>
    %44 = arith.maximumf %42, %43 : vector<16x16xf32>
    %c0_31 = arith.constant 0 : index
    %c0_32 = arith.constant 0 : index
    %c0_33 = arith.constant 0 : index
    %45 = vector.load %arg6[%c0_31, %c0_32, %c0_33] : memref<1x16x16xf32, #tpu.memory_space<vmem>>, vector<1x16x16xf32>
    %46 = vector.shape_cast %45 : vector<1x16x16xf32> to vector<16x16xf32>
    %47 = vector.shape_cast %44 : vector<16x16xf32> to vector<1x16x16xf32>
    tpu.vector_store %arg6[%c0_31, %c0_32, %c0_33], %47 {strides = array<i32>} : memref<1x16x16xf32, #tpu.memory_space<vmem>>, vector<1x16x16xf32>,
    return
  }
  func.func @transform_0(%arg0: i32) -> (i32, i32, i32) {
    %c0_i32 = arith.constant 0 : i32
    %c0_i32_0 = arith.constant 0 : i32
    %c0_i32_1 = arith.constant 0 : i32
    return %arg0, %c0_i32, %c0_i32_0 : i32, i32, i32
  }
  func.func @transform_1(%arg0: i32) -> (i32, i32, i32) {
    %c0_i32 = arith.constant 0 : i32
    %c0_i32_0 = arith.constant 0 : i32
    %c0_i32_1 = arith.constant 0 : i32
    %c0_i32_2 = arith.constant 0 : i32
    return %c0_i32, %c0_i32_0, %c0_i32_1 : i32, i32, i32
  }
  func.func @transform_2(%arg0: i32) -> (i32, i32) {
    %c0_i32 = arith.constant 0 : i32
    %c0_i32_0 = arith.constant 0 : i32
    %c0_i32_1 = arith.constant 0 : i32
    return %c0_i32, %c0_i32_0 : i32, i32
  }
  func.func @transform_3(%arg0: i32) -> (i32, i32, i32) {
    %c0_i32 = arith.constant 0 : i32
    %c0_i32_0 = arith.constant 0 : i32
    %c0_i32_1 = arith.constant 0 : i32
    %c0_i32_2 = arith.constant 0 : i32
    return %c0_i32, %c0_i32_0, %c0_i32_1 : i32, i32, i32
  }
  func.func @transform_4(%arg0: i32) -> (i32, i32) {
    %c0_i32 = arith.constant 0 : i32
    %c0_i32_0 = arith.constant 0 : i32
    %c0_i32_1 = arith.constant 0 : i32
    return %c0_i32, %c0_i32_0 : i32, i32
  }
  func.func @transform_5(%arg0: i32) -> (i32, i32, i32) {
    %c0_i32 = arith.constant 0 : i32
    %c0_i32_0 = arith.constant 0 : i32
    %c0_i32_1 = arith.constant 0 : i32
    return %arg0, %c0_i32, %c0_i32_0 : i32, i32, i32
  }
}

</mosaic_0001>

<bundles_post_ra>
// kernel: tpu_custom_call.1
= control target key start
LH: loop header
LB: loop body
LE: loop exit
PB: predicated region body
PF: predicated region fallthrough
CT: control target
= control target key end

     0   :  { %10 = vsyncpa [#allocation3], 0  ;;  %s1115_s0 = inlined_call_operand.vmem [shape: f32[2,16,16], index: 0, kind: input, shape index: {}]   ;;  %s1116_s1 = inlined_call_operand.hbm [shape: f32[3,16,16], index: 1, kind: input, shape index: {}]   ;;  %s1117_s2 = inlined_call_operand.vmem [shape: f32[16,1], index: 2, kind: input, shape index: {}]   ;;  %s1118_s3 = inlined_call_operand.hbm [shape: f32[3,16,16], index: 3, kind: input, shape index: {}]   ;;  %s1119_s4 = inlined_call_operand.vmem [shape: f32[16,1], index: 4, kind: input, shape index: {}]   ;;  %s1120_s5 = inlined_call_operand.hbm [shape: f32[2,16,16], index: 5, kind: output, shape index: {}]  }
   0x1   :  { %11 = vsyncpa [#allocation6], 0 }
   0x2   :  { %12 = vsyncpa [#allocation4], 0 }
   0x3   :  { %14 = vsyncpa [#allocation4 + $0x1], 0  ;;  %s949_s18 = smov 0   ;;  %s951_s19 = smov 0  }
   0x4   :  { %s953_s20 = smov 0   ;;  %s955_s21 = smov 0  }
   0x5 LB: > { %s970_s22 = sadd.s32 4294967295, %s907_s21   ;;  %s648_s23 = sadd.s32 4294967294, %s907_s21   ;;  %s907_s21 = sphi %s955_s21, %s1127_s21   ;;  %s903_s20 = sphi %s953_s20, %s1126_s20   ;;  %s899_s19 = sphi %s951_s19, %s1125_s19   ;;  %s895_s18 = sphi %s949_s18, %s1124_s18  }
   0x6   : > { %s974_s24 = sadd.s32 1, %s907_s21   ;;  %s137_s25 = sadd.s32 1, %s903_s20 }
   0x7   : > { %s134_s26 = ssub.s32 %s907_s21, %s974_s24  ;;  %p147_p0 = scmp.ne.s32.totalorder %s903_s20, %s899_s19 }
   0x8   : > { %p135_p1 = scmp.eq.s32.totalorder %s134_s26, 0  ;;  %p148_p2 = scmp.eq.s32.totalorder %s970_s22, 1 }
   0x9   : > { %p153_p3 = scmp.ne.s32.totalorder %s899_s19, %s895_s18  ;;  %p154_p4 = scmp.eq.s32.totalorder %s648_s23, 1 }
   0xa   : > { %s985_s27 = scalar_select %p135_p1, %s903_s20, %s137_s25  }
   0xb   : > { %p987_p5 = por %p148_p2, %p147_p0  ;;  %p991_p6 = por %p154_p4, %p153_p3 }
   0xc   : > { %p649_p7 = scmp.ge.s32.totalorder %s907_s21, 1  ;;  %p161_p8 = scmp.lt.s32.totalorder %s907_s21, 3 }
   0xd   : > { %p707_p9 = scmp.eq.s32.totalorder %s970_s22, 0  ;;  %s172_s8 = sshll.u32 %s1116_s1, 4  ;;  %s173_s8 = int_to_ptr.hbm [resolvable:$true] %s172_s8 }
   0xe   : > { %p998_p10 = pnand %p649_p7, %p161_p8  ;;  %s909_s9 = smov [#allocation2]  }
   0xf   : > { %s174_s10 = sshll.u32 %s909_s9, 4  ;;  %s189_s13 = sshll.u32 %s1118_s3, 4  ;;  %s175_s10 = int_to_ptr.vmem [resolvable:$true] %s174_s10  ;;  %s190_s13 = int_to_ptr.hbm [resolvable:$true] %s189_s13 }
  0x10   : > { %p696_p11 = pneg %p998_p10  ;;  %s910_s14 = smov 128  }
  0x11   : > { %s911_s15 = smov 8   ;;  %s912_s16 = smov [#allocation5]  }
  0x12   : > { %p697_p12 = pnand %p707_p9, %p696_p11  ;;  %s191_s17 = sshll.u32 %s912_s16, 4  ;;  %s192_s17 = int_to_ptr.vmem [resolvable:$true] %s191_s17 }
  0x13   : > { %218 = sbr.rel (%p998_p10) target bundleno = 810 (0x32a), region = 40 }
  0x14   : > { %699 = dma.hbm_to_vmem [thread:$0]  (!%p697_p12), %s173_s8, 768, %s175_s10, [#allocation3], %s910_s14, %s910_s14, %s911_s15  }
  0x15   : > { %702 = dma.hbm_to_vmem [thread:$0]  (!%p697_p12), %s190_s13, 768, %s192_s17, [#allocation6], %s910_s14, %s910_s14, %s911_s15  }
  0x18   : > { %882 = dma.done.wait (%p707_p9), [#allocation3], 768  }
  0x19   : > { %884 = vsyncadd (%p707_p9), [#allocation3], 4294966528 }
  0x1a   : > { %886 = dma.done.wait (%p707_p9), [#allocation6], 768  }
  0x1b   : > { %888 = vsyncadd (%p707_p9), [#allocation6], 4294966528  ;;  %p252_p13 = scmp.lt.s32.totalorder %s970_s22, 1  ;;  %s913_s7 = smov 1   ;;  %vm267_vm0 = vcmask 7168   ;;  %vm270_vm1 = vcmask 138240  }
  0x1c   : > { %v276_v5 = vld [vmem:[#allocation2 + $0x8] sm:$0xff]  ;;  %vm277_vm2 = vcmask 130048   ;;  %s914_s8 = smov 126   ;;  %s915_s9 = smov 127   ;;  %v275_v10 = vld [vmem:[#allocation2] sm:$0xff]  ;;  %v916_v12 = vmov 0  }
  0x1d   : > { %s253_s23 = scalar_select %p252_p13, %s970_s22, 1  ;;  %v274_v11 = vld [vmem:[%s1117_s2 + $0x8] sm:$0xff]  ;;  %764 = vset.pattern.permute.xlu2 %v916_v12  ;;  %775 = vset.pattern.permute.xlu1 %v916_v12  ;;  %v273_v13 = vld [vmem:[%s1117_s2] sm:$0xff]  ;;  %v320_v21 = vld [vmem:[#allocation2 + $0x10] sm:$0xff] }
  0x1e   : > { %314 = vperm.xlu2 %764, %v274_v11   ;;  %776 = vset.pattern.permute.xlu0 %v916_v12  ;;  %v362_v17 = vld [vmem:[#allocation2 + $0x20] sm:$0xff]  ;;  %v321_v22 = vld [vmem:[#allocation2 + $0x18] sm:$0xff]  ;;  %v363_v23 = vld [vmem:[#allocation2 + $0x28] sm:$0xff]  ;;  %s681_s26 = sshll.u32 %s970_s22, 4  ;;  %s857_s15 = scalar_lea.hbm %s1120_s5, 32 }
  0x1f   : > { %s680_s25 = sshll.u32 %s253_s23, 4  ;;  %v417_v46 = vld [vmem:[#allocation5] sm:$0xff]  ;;  %v418_v48 = vld [vmem:[#allocation5 + $0x8] sm:$0xff]  ;;  %v416_v49 = vld [vmem:[%s1119_s4 + $0x8] sm:$0xff]  ;;  %s249_s23 = sand.u32 1, %s899_s19  }
  0x20   : > { %s256_s6 = scalar_lea.vmem %s1115_s0, %s680_s25  ;;  %v461_v53 = vld [vmem:[#allocation5 + $0x10] sm:$0xff]  ;;  %v462_v55 = vld [vmem:[#allocation5 + $0x18] sm:$0xff]  ;;  %v503_v59 = vld [vmem:[#allocation5 + $0x20] sm:$0xff]  ;;  %s656_s25 = sshll.u32 %s249_s23, 4 }
  0x21   : > { %v1027_v0 = vld [vmem:[%s256_s6 + $0x8] sm:$0xff]  ;;  %v1031_v1 = vld [vmem:[%s256_s6] sm:$0xff]  ;;  %v504_v60 = vld [vmem:[#allocation5 + $0x28] sm:$0xff]  ;;  %s549_s22 = scalar_lea.sflag [#allocation4], %s249_s23 }
  0x22   : > { %263 = vrot.lane.b32.xlu0 %v1027_v0, %s913_s7  ;;  %v415_v54 = vld [vmem:[%s1119_s4] sm:$0xff] }
  0x26   : > { %309 = vperm.xlu2 %764, %v273_v13  }
  0x2a   : > { %261 = vrot.lane.b32.xlu0 %v1031_v1, %s913_s7 }
  0x78   : > { %v315_v24 = vpop.permute.xlu2 %314 }
  0x80   : > { %v310_v26 = vpop.permute.xlu2 %309 }
  0x94   : > { %v264_v2 = vpop.permute.xlu0 %263 }
  0x95   : > { %v269_v3 = vsel %vm267_vm0, 0.0, %v264_v2 }
  0x96   : > { %659 = vmatpush.msk.msra.mxu0 %vm270_vm1, %v269_v3  ;;  %682 = vmatpush.msk.msra.mxu2 %vm270_vm1, %v269_v3  ;;  %v272_v8 = vsel %vm270_vm1, %v269_v3, 0.0 }
  0x9c   : > { %v262_v4 = vpop.permute.xlu0 %261 }
  0x9d   : > { %v268_v6 = vsel %vm267_vm0, 0.0, %v262_v4 }
  0x9e   : > { %660 = vmatpush.msk.msra.mxu0 %vm270_vm1, %v268_v6  ;;  %683 = vmatpush.msk.msra.mxu2 %vm270_vm1, %v268_v6  ;;  %v271_v7 = vsel %vm270_vm1, %v268_v6, 0.0 }
  0x9f   : > { %v754_v9 = vpack.i.bf16 %v271_v7, %v272_v8  ;;  %662 = vmatmul.msk.f32.vlgmr.msra.gmra.mxu2 %vm277_vm2, %v276_v5  ;;  %661 = vmatmul.msk.f32.vlgmr.msra.gmra.mxu0 %vm277_vm2, %v275_v10 }
  0xa1   : > { %755 = vrot.lane.b32.xlu1 %v754_v9, %s914_s8 }
  0xa9   : > { %760 = vrot.lane.b32.xlu1 %v754_v9, %s915_s9 }
 0x113   : > { %v756_v14 = vpop.permute.xlu1 %755 }
 0x114   : > { %v757_v15 = vunpack.i.l.bf16 %v756_v14  ;;  %v758_v16 = vunpack.i.h.bf16 %v756_v14 }
 0x116   : > { %390 = vmatpush.msrb.mxu2 %v757_v15 }
 0x118   : > { %391 = vmatpush.msrb.mxu2 %v758_v16 }
 0x119   : > { %665 = vmatmul.msk.f32.vlgmr.msrb.gmra.mxu2 %vm277_vm2, %v362_v17 }
 0x11b   : > { %v761_v18 = vpop.permute.xlu1 %760 }
 0x11c   : > { %v762_v19 = vunpack.i.l.bf16 %v761_v18  ;;  %v763_v20 = vunpack.i.h.bf16 %v761_v18  ;;  %v301_v27 = vpop.f32.mrf.mxu0 }
 0x11d   : > { %v317_v29 = vadd.f32 %v310_v26, %v301_v27 }
 0x11e   : > { %350 = vmatpush.msra.mxu1 %v762_v19  ;;  %684 = vmatpush.msra.mxu3 %v762_v19 }
 0x120   : > { %351 = vmatpush.msra.mxu1 %v763_v20  ;;  %685 = vmatpush.msra.mxu3 %v763_v20 }
 0x121   : > { %663 = vmatmul.msk.f32.vlgmr.msra.gmra.mxu1 %vm277_vm2, %v320_v21  ;;  %664 = vmatmul.msk.f32.vlgmr.msra.gmra.mxu3 %vm277_vm2, %v321_v22 }
 0x122   : > { %666 = vmatmul.msk.f32.gmra.mxu2 %vm277_vm2, %v363_v23  ;;  %v304_v25 = vpop.f32.mrf.mxu2 }
 0x123   : > { %v318_v33 = vadd.f32 %v315_v24, %v304_v25 }
 0x19c   : > { %v393_v28 = vpop.f32.mrf.mxu2 }
 0x19e   : > { %v353_v30 = vpop.f32.mrf.mxu1 }
 0x19f   : > { %v359_v31 = vadd.f32 %v353_v30, %v317_v29 }
 0x1a1   : > { %v399_v32 = vadd.f32 %v393_v28, %v359_v31 }
 0x1a3   : > { %v401_v34 = vmax.f32 %v399_v32, 0.0 }
 0x1a4   : > { %v356_v35 = vpop.f32.mrf.mxu3 }
 0x1a5   : > { %v360_v36 = vadd.f32 %v356_v35, %v318_v33  ;;  %405 = vrot.lane.b32.xlu1 %v401_v34, %s913_s7  ;;  %v396_v37 = vpop.f32.mrf.mxu2 }
 0x1a7   : > { %v400_v38 = vadd.f32 %v396_v37, %v360_v36 }
 0x1a9   : > { %v402_v39 = vmax.f32 %v400_v38, 0.0 }
 0x1ab   : > { %407 = vrot.lane.b32.xlu0 %v402_v39, %s913_s7  ;;  %s560_s7 = scalar_lea.hbm %s1120_s5, %s681_s26 }
 0x1ac   : > { %s563_s10 = sshll.u32 %s560_s7, 4  ;;  %s564_s10 = int_to_ptr.hbm [resolvable:$true] %s563_s10 }
 0x1ad   : > { %450 = vperm.xlu1 %775, %v415_v54   ;;  %s851_s11 = sshra.s32 %s564_s10, 4  ;;  %s852_s11 = int_to_ptr.hbm [resolvable:$true] %s851_s11 }
 0x1ae   : > { %s853_s12 = scalar_lea.hbm %s852_s11, 16  ;;  %p858_p3 = scmp.lt.s32.totalorder %s852_s11, %s1120_s5 }
 0x1af   : > { %p854_p0 = scmp.ne.s32.totalorder %s852_s11, %s853_s12  ;;  %p859_p4 = scmp.lt.s32.totalorder %s857_s15, %s853_s12 }
 0x1b1   : > { %p855_p1 = pnand %p854_p0, %p987_p5  ;;  %p860_p7 = por %p859_p4, %p858_p3 }
 0x1b3   : > { %p856_p2 = pneg %p855_p1 }
 0x1b5   : > { %p861_p8 = pnand %p860_p7, %p856_p2 }
 0x217   : > { %v406_v40 = vpop.permute.xlu1 %405 }
 0x218   : > { %v411_v41 = vsel %vm267_vm0, 0.0, %v406_v40 }
 0x219   : > { %v413_v44 = vsel %vm270_vm1, %v411_v41, 0.0 }
 0x21d   : > { %v408_v42 = vpop.permute.xlu0 %407 }
 0x21e   : > { %v412_v43 = vsel %vm267_vm0, 0.0, %v408_v42 }
 0x21f   : > { %v414_v45 = vsel %vm270_vm1, %v412_v43, 0.0  ;;  %667 = vmatpush.msk.msrb.mxu3 %vm270_vm1, %v412_v43  ;;  %v451_v61 = vpop.permute.xlu1 %450 }
 0x220   : > { %v770_v47 = vpack.i.bf16 %v413_v44, %v414_v45 }
 0x221   : > { %668 = vmatpush.msk.msrb.mxu3 %vm270_vm1, %v411_v41 }
 0x222   : > { %669 = vmatmul.msk.f32.vlgmr.msrb.gmra.mxu3 %vm277_vm2, %v417_v46  ;;  %771 = vrot.lane.b32.xlu0 %v770_v47, %s914_s8  ;;  %s251_s8 = scalar_lea.vmem [#allocation7], %s656_s25 }
 0x223   : > { %766 = vrot.lane.b32.xlu2 %v770_v47, %s915_s9  ;;  %s561_s9 = sshll.u32 %s251_s8, 4  ;;  %s562_s9 = int_to_ptr.vmem [resolvable:$true] %s561_s9 }
 0x22a   : > { %670 = vmatmul.msk.f32.gmra.mxu3 %vm277_vm2, %v418_v48 }
 0x22b   : > { %455 = vperm.xlu2 %764, %v416_v49  }
 0x27d   : > { %v767_v50 = vpop.permute.xlu2 %766 }
 0x27e   : > { %v768_v51 = vunpack.i.l.bf16 %v767_v50  ;;  %v769_v52 = vunpack.i.h.bf16 %v767_v50 }
 0x280   : > { %491 = vmatpush.msrb.mxu0 %v768_v51 }
 0x282   : > { %492 = vmatpush.msrb.mxu0 %v769_v52 }
 0x283   : > { %671 = vmatmul.msk.f32.vlgmr.msrb.gmra.mxu0 %vm277_vm2, %v461_v53 }
 0x285   : > { %v456_v8 = vpop.permute.xlu2 %455 }
 0x28b   : > { %672 = vmatmul.msk.f32.gmra.mxu0 %vm277_vm2, %v462_v55 }
 0x294   : > { %v772_v56 = vpop.permute.xlu0 %771 }
 0x295   : > { %v773_v57 = vunpack.i.l.bf16 %v772_v56  ;;  %v774_v58 = vunpack.i.h.bf16 %v772_v56 }
 0x297   : > { %531 = vmatpush.msrb.mxu1 %v773_v57 }
 0x299   : > { %532 = vmatpush.msrb.mxu1 %v774_v58 }
 0x29a   : > { %673 = vmatmul.msk.f32.vlgmr.msrb.gmra.mxu1 %vm277_vm2, %v503_v59 }
 0x2a2   : > { %674 = vmatmul.msk.f32.gmra.mxu1 %vm277_vm2, %v504_v60 }
 0x2a5   : > { %v442_v62 = vpop.f32.mrf.mxu3 }
 0x2a6   : > { %v458_v63 = vadd.f32 %v451_v61, %v442_v62 }
 0x2ad   : > { %v445_v6 = vpop.f32.mrf.mxu3 }
 0x2ae   : > { %v459_v10 = vadd.f32 %v456_v8, %v445_v6 }
 0x300   : > { %v494_v2 = vpop.f32.mrf.mxu0 }
 0x301   : > { %v500_v3 = vadd.f32 %v494_v2, %v458_v63 }
 0x308   : > { %v497_v9 = vpop.f32.mrf.mxu0 }
 0x309   : > { %v501_v12 = vadd.f32 %v497_v9, %v459_v10 }
 0x317   : > { %v534_v4 = vpop.f32.mrf.mxu1 }
 0x318   : > { %v540_v5 = vadd.f32 %v534_v4, %v500_v3 }
 0x31a   : > { %v542_v7 = vadd.f32 %v540_v5, %v1031_v1 }
 0x31c   : > { %v544_v11 = vmax.f32 %v542_v7, 0.0 }
 0x31e   : > { %546 = vst.msk [vmem:[%s251_s8] sm:$0xff] %vm277_vm2, %v544_v11 }
 0x31f   : > { %v537_v13 = vpop.f32.mrf.mxu1 }
 0x320   : > { %v541_v14 = vadd.f32 %v537_v13, %v501_v12 }
 0x322   : > { %v543_v1 = vadd.f32 %v541_v14, %v1027_v0 }
 0x324   : > { %v545_v15 = vmax.f32 %v543_v1, 0.0 }
 0x326   : > { %547 = vst.msk [vmem:[%s251_s8 + $0x8] sm:$0xff] %vm277_vm2, %v545_v15 }
 0x327   : > { %864 = shalt.err (!%p861_p8)
}
 0x328   : > { %s917_s23 = smov 128   ;;  %s918_s25 = smov 8  }
 0x329   : > { %694 = dma.vmem_to_hbm [thread:$0]  (%p987_p5), %s562_s9, 256, %s564_s10, %s549_s22, %s917_s23, %s917_s23, %s918_s25  }
 0x32a PF: > { %p711_p9 = scmp.ge.s32.totalorder %s907_s21, 2  ;;  %s578_s26 = sand.u32 1, %s895_s18  }
 0x32b   : > { %s579_s30 = scalar_lea.sflag [#allocation4], %s578_s26 }
 0x32c   : > { %p704_p10 = pnand %p711_p9, %p991_p6 }
 0x32e   : > { %p705_p11 = pneg %p704_p10 }
 0x330   : > { %890 = dma.done.wait (%p705_p11), %s579_s30, 256  }
 0x331   : > { %892 = vsyncadd (%p705_p11), %s579_s30, 4294967040  ;;  %p17_p12 = scmp.ge.s32.totalorder %s974_s24, 4   ;;  %s1124_s18 = smov %s899_s19 }
 0x332   : > { %s1125_s19 = smov %s903_s20  ;;  %s1126_s20 = smov %s985_s27 }
 0x333   : > { %s1127_s21 = smov %s974_s24  ;;  %19 = sbr.rel (!%p17_p12) target bundleno = 5 (0x5), region = 88 }
 0x338   :  { %585 = vsyncpa [#allocation3], 1 }
 0x339   :  { %587 = vsyncpa [#allocation3 + $0x1], 1 }
 0x33a   :  { %588 = vsyncpa [#allocation6], 1 }
 0x33b   :  { %589 = vsyncpa [#allocation4], 1 }
 0x33c   :  { %591 = vsyncpa [#allocation4 + $0x1], 1 }

</bundles_post_ra>
